<compile_context>
chip_gen: v7x
topology: tpu7x:2x2x1
jax: 0.10.0
libtpu: 0.0.40
codegen_flags: <defaults>
</compile_context>

<pallas_src>
import functools
import math

import jax
import jax.numpy as jnp
from jax.experimental import pallas as pl
from jax.experimental.pallas import tpu as pltpu


_MIB = 1024 * 1024


# ---------------------------------------------------------------------------
# Kernels
# ---------------------------------------------------------------------------

def _ls_single_pass_kernel(x_ref, o_ref, *, eps, inv_d):
    """Whole (TN, D) row block resident in VMEM: fused moment + scale.

    All math in f32 with a single cast at the store (matches reference;
    f32 temporaries are accounted for in the wrapper's VMEM budget).
    Rows belonging to a ragged batch tail compute garbage, but their stores
    are masked by Pallas, so they never pollute valid rows.
    """
    xf = x_ref[...].astype(jnp.float32)
    ssq = jnp.sum(xf * xf, axis=1, keepdims=True)          # (TN, 1) f32
    inv = jax.lax.rsqrt(ssq * inv_d + eps)                 # EUP
    o_ref[...] = (xf * inv).astype(o_ref.dtype)


def _ls_moment_kernel(x_ref, inv_ref, *, td, d_true, ragged, eps, inv_d):
    """Two-pass path, pass 1: per-row sum(x^2) over D tiles, then fused
    rsqrt finalize on the last D step (inv_ref ends up holding the scale)."""
    k = pl.program_id(1)

    @pl.when(k == 0)
    def _():
        inv_ref[...] = jnp.zeros_like(inv_ref)

    x = x_ref[...].astype(jnp.float32)
    if ragged:
        # Mask out the padded columns of the ragged last D tile.
        col = k * td + jax.lax.broadcasted_iota(jnp.int32, x.shape, 1)
        x = jnp.where(col < d_true, x, 0.0)
    inv_ref[...] += jnp.sum(x * x, axis=1, keepdims=True)

    @pl.when(k == pl.num_programs(1) - 1)
    def _():
        inv_ref[...] = jax.lax.rsqrt(inv_ref[...] * inv_d + eps)


def _ls_scale_kernel(inv_ref, x_ref, o_ref):
    """Two-pass path, pass 2: y = x * inv (per-row inv precomputed), f32 math."""
    o_ref[...] = (x_ref[...].astype(jnp.float32) * inv_ref[...]).astype(o_ref.dtype)


# ---------------------------------------------------------------------------
# Wrapper
# ---------------------------------------------------------------------------

def _vmem_capacity_bytes():
    try:
        return int(pltpu.get_tpu_info().vmem_capacity_bytes)
    except Exception:
        # Derive from the device kind instead of silently assuming 64 MiB
        # (which would halve the budget on v4/v5e/v6e and prematurely trigger
        # the 1.5x-traffic two-pass fallback).
        try:
            kind = jax.devices()[0].device_kind.lower()
        except Exception:
            kind = ""
        if any(tag in kind for tag in ("v4", "v5", "v6")):
            return 128 * _MIB
        return 64 * _MIB           # v7x / unknown: conservative


def _round_down(x, m):
    return (x // m) * m


def _round_up(x, m):
    return ((x + m - 1) // m) * m


def layer_scaling(x, eps=1e-5, *, _force_two_pass=False, _force_td=None,
                  _allow_single_buffer=True):
    """LayerScaling forward. x: (N, C, H, W) (or any (N, ...)) -> same shape."""
    orig_shape = x.shape
    n = x.shape[0]
    d = math.prod(x.shape[1:])
    x2d = x.reshape(n, d)
    dtype = x.dtype
    itemsize = jnp.dtype(dtype).itemsize
    inv_d = 1.0 / d

    base = max(8, 32 // itemsize)        # sublane rows: f32->8, bf16->16, i8->32

    cap = _vmem_capacity_bytes()
    budget = min(int(cap * 0.45), 48 * _MIB)     # pipelined-footprint budget
    vmem_limit = min(int(cap * 0.75), 96 * _MIB)

    # Per-row VMEM cost of the fused fast path, *including* the f32
    # temporaries (upcast tile + f32 scaled result) the kernel materializes.
    f32_temp_per_row = (2 * 4 * d) if itemsize < 4 else (4 * d)
    per_row_db = 4 * d * itemsize + f32_temp_per_row   # 2 in + 2 out buffers
    per_row_sb = 2 * d * itemsize + f32_temp_per_row   # 1 in + 1 out buffer

    tn_min = min(n, base)
    fits_db = (not _force_two_pass) and tn_min * per_row_db <= budget
    fits_sb = (not _force_two_pass) and _allow_single_buffer and \
        tn_min * per_row_sb <= budget

    if fits_db or fits_sb:
        # ------------------------- fused single pass -------------------------
        # TN policy: ~2 MiB input tiles (already ~roofline for this streaming
        # op) and keep the grid at >= ~8 steps when N allows it, so the
        # pipeline double-buffers and the "parallel" batch axis can split
        # across TensorCores (v7x megacore).
        TILE_TARGET = 2 * _MIB
        if n <= base:
            tn = n
        else:
            tn = max(base, _round_down(TILE_TARGET // max(d * itemsize, 1), base))
            for steps in (8, 4, 2):                 # prefer >= 8 grid steps
                if n // steps >= base:
                    tn = min(tn, _round_down(n // steps, base))
                    break
            per_row = per_row_db if fits_db else per_row_sb
            tn = min(tn, max(base, _round_down(budget // per_row, base)))
            tn = min(tn, _round_down(n, base))
            tn = max(tn, base)
        grid = (pl.cdiv(n, tn),)

        spec_kwargs = {}
        if not fits_db:
            # Full-D row block only fits single-buffered: still 2x total HBM
            # traffic vs. the 3x of the two-pass fallback below.
            spec_kwargs = dict(pipeline_mode=pl.Buffered(1))

        out2d = pl.pallas_call(
            functools.partial(_ls_single_pass_kernel, eps=eps, inv_d=inv_d),
            out_shape=jax.ShapeDtypeStruct((n, d), dtype),
            grid=grid,
            in_specs=[pl.BlockSpec((tn, d), lambda i: (i, 0), **spec_kwargs)],
            out_specs=pl.BlockSpec((tn, d), lambda i: (i, 0), **spec_kwargs),
            compiler_params=pltpu.CompilerParams(
                dimension_semantics=("parallel",),
                vmem_limit_bytes=vmem_limit),
            cost_estimate=pl.CostEstimate(
                flops=3 * n * d,
                transcendentals=n,
                bytes_accessed=2 * n * d * itemsize),
        )(x2d)
        return out2d.reshape(orig_shape)

    # ------------------- large-D fallback: two passes over x ------------------
    tn = min(n, base)
    # TODO(synk): on v7x, when cdiv(n, tn) == 1 pass 1 runs on a single
    # TensorCore; splitting D across cores with partial-sum outputs (summed in
    # the finalize) would recover the second core for small-batch inputs.

    if _force_td is not None:
        td1 = td2 = int(_force_td)
    else:
        # Pass 1 pipelines only x input tiles (+ f32 upcast temp) plus a tiny
        # resident (tn, 1) accumulator -> its D tile can be larger than
        # pass 2's, which also pipelines (tn, td) output tiles.
        td1 = _round_down(budget // max(tn * (2 * itemsize + 4), 1), 128)
        td2 = _round_down(budget // max(tn * (4 * itemsize + 2 * 4), 1), 128)
        td1 = max(td1, 128)
        td2 = max(td2, 128)
    if td1 >= d:
        td1 = d
    if td2 >= d:
        td2 = d
    td1 = min(td1, _round_up(d, 128))
    td2 = min(td2, _round_up(d, 128))

    # Pass 1: per-row sum of squares with fused rsqrt finalize -> inv (N, 1).
    inv = pl.pallas_call(
        functools.partial(_ls_moment_kernel, td=td1, d_true=d,
                          ragged=(d % td1) != 0, eps=eps, inv_d=inv_d),
        out_shape=jax.ShapeDtypeStruct((n, 1), jnp.float32),
        grid=(pl.cdiv(n, tn), pl.cdiv(d, td1)),
        in_specs=[pl.BlockSpec((tn, td1), lambda i, k: (i, k))],
        out_specs=pl.BlockSpec((tn, 1), lambda i, k: (i, 0)),
        compiler_params=pltpu.CompilerParams(
            dimension_semantics=("parallel", "arbitrary"),
            vmem_limit_bytes=vmem_limit),
        cost_estimate=pl.CostEstimate(
            flops=2 * n * d,
            transcendentals=n,
            bytes_accessed=n * d * itemsize + n * 4),
    )(x2d)

    # Pass 2: re-read x and scale by the precomputed per-row inv.
    out2d = pl.pallas_call(
        _ls_scale_kernel,
        out_shape=jax.ShapeDtypeStruct((n, d), dtype),
        grid=(pl.cdiv(n, tn), pl.cdiv(d, td2)),
        in_specs=[pl.BlockSpec((tn, 1), lambda i, k: (i, 0)),
                  pl.BlockSpec((tn, td2), lambda i, k: (i, k))],
        out_specs=pl.BlockSpec((tn, td2), lambda i, k: (i, k)),
        compiler_params=pltpu.CompilerParams(
            dimension_semantics=("parallel", "parallel"),
            vmem_limit_bytes=vmem_limit),
        cost_estimate=pl.CostEstimate(
            flops=n * d,
            transcendentals=0,
            bytes_accessed=2 * n * d * itemsize + n * 4),
    )(inv, x2d)

    return out2d.reshape(orig_shape)


# ---------------------------------------------------------------------------
# Reference + test
# ---------------------------------------------------------------------------

def _reference(x, eps=1e-5):
    n = x.shape[0]
    tmp = x.reshape(n, -1).astype(jnp.float32)
    moment2 = jnp.mean(tmp * tmp, axis=1, keepdims=True)
    moment2 = moment2.reshape((n,) + (1,) * (x.ndim - 1))
    return (x.astype(jnp.float32) / jnp.sqrt(moment2 + eps)).astype(x.dtype)


if __name__ == "__main__":
    key = jax.random.PRNGKey(0)
    k1, k2, k3 = jax.random.split(key, 3)

    # 1) Small NCHW f32 input (module's documented shape) -> fused fast path.
    x = jax.random.normal(k1, (2, 4, 16, 16), dtype=jnp.float32)
    out = jax.block_until_ready(layer_scaling(x, eps=1e-5))
    ref = _reference(x, eps=1e-5)
    assert out.shape == x.shape and out.dtype == x.dtype
    assert jnp.allclose(out, ref, atol=1e-5, rtol=1e-5)

    # 2) Large-D two-pass fallback (with a ragged last D tile), forced small.
    out2 = jax.block_until_ready(
        layer_scaling(x, eps=1e-5, _force_two_pass=True, _force_td=384))
    assert jnp.allclose(out2, ref, atol=1e-5, rtol=1e-5)

    # 3) Ragged batch dimension (N not a multiple of the sublane base).
    x3 = jax.random.normal(k2, (10, 3, 8, 8), dtype=jnp.float32)
    out3 = jax.block_until_ready(layer_scaling(x3, eps=1e-5))
    assert jnp.allclose(out3, _reference(x3, eps=1e-5), atol=1e-5, rtol=1e-5)

    # 4) bf16 input: f32 math inside the kernel, single cast at the store.
    x4 = jax.random.normal(k3, (4, 8, 16, 16), dtype=jnp.bfloat16)
    out4 = jax.block_until_ready(layer_scaling(x4, eps=1e-5))
    ref4 = _reference(x4, eps=1e-5)
    assert out4.dtype == x4.dtype
    assert jnp.allclose(out4.astype(jnp.float32), ref4.astype(jnp.float32),
                        atol=2e-2, rtol=2e-2)

    print("KERNEL_OK")
</pallas_src>

<mosaic_0001>
module attributes {stable_mosaic.version = 11 : i64} {
  func.func @_ls_single_pass_kernel(%arg0: i32, %arg1: memref<2x1024xf32, #tpu.memory_space<vmem>>, %arg2: memref<2x1024xf32, #tpu.memory_space<vmem>>) attributes {dimension_semantics = [#tpu.dimension_semantics<parallel>], iteration_bounds = array<i64: 1>, scalar_prefetch = 0 : i64, scratch_operands = 0 : i64, tpu.core_type = #tpu.core_type<tc>, window_params = [{transform_indices = @transform_0, window_bounds = array<i64: 2, 1024>}, {transform_indices = @transform_1, window_bounds = array<i64: 2, 1024>}]} {
    %c0 = arith.constant 0 : index
    %c0_0 = arith.constant 0 : index
    %0 = vector.load %arg1[%c0, %c0_0] : memref<2x1024xf32, #tpu.memory_space<vmem>>, vector<2x1024xf32>
    %1 = arith.mulf %0, %0 : vector<2x1024xf32>
    %cst = arith.constant dense<0.000000e+00> : vector<2xf32>
    %2 = vector.multi_reduction <add>, %1, %cst [1] : vector<2x1024xf32> to vector<2xf32>
    %3 = vector.shape_cast %2 : vector<2xf32> to vector<2x1xf32>
    %cst_1 = arith.constant 9.765625E-4 : f32
    %4 = vector.broadcast %cst_1 : f32 to vector<2x1xf32>
    %5 = arith.mulf %3, %4 : vector<2x1xf32>
    %cst_2 = arith.constant 9.99999974E-6 : f32
    %6 = vector.broadcast %cst_2 : f32 to vector<2x1xf32>
    %7 = arith.addf %5, %6 : vector<2x1xf32>
    %8 = math.rsqrt %7 : vector<2x1xf32>
    %9 = vector.broadcast %8 : vector<2x1xf32> to vector<2x1024xf32>
    %10 = arith.mulf %0, %9 : vector<2x1024xf32>
    %c0_3 = arith.constant 0 : index
    %c0_4 = arith.constant 0 : index
    %11 = vector.load %arg2[%c0_3, %c0_4] : memref<2x1024xf32, #tpu.memory_space<vmem>>, vector<2x1024xf32>
    tpu.vector_store %arg2[%c0_3, %c0_4], %10 {strides = array<i32>} : memref<2x1024xf32, #tpu.memory_space<vmem>>, vector<2x1024xf32>,
    return
  }
  func.func @transform_0(%arg0: i32) -> (i32, i32) {
    %c0_i32 = arith.constant 0 : i32
    %c0_i32_0 = arith.constant 0 : i32
    return %arg0, %c0_i32 : i32, i32
  }
  func.func @transform_1(%arg0: i32) -> (i32, i32) {
    %c0_i32 = arith.constant 0 : i32
    %c0_i32_0 = arith.constant 0 : i32
    return %arg0, %c0_i32 : i32, i32
  }
}

</mosaic_0001>

<bundles_post_ra>
// kernel: tpu_custom_call.1
= control target key start
LH: loop header
LB: loop body
LE: loop exit
PB: predicated region body
PF: predicated region fallthrough
CT: control target
= control target key end

     0   :  { %6 = vsyncpa [#allocation3], 0  ;;  %s218_s0 = inlined_call_operand.hbm [shape: f32[2,1024], index: 0, kind: input, shape index: {}]   ;;  %s219_s1 = inlined_call_operand.hbm [shape: f32[2,1024], index: 1, kind: output, shape index: {}]  }
   0x1   :  { %7 = vsyncpa [#allocation4], 0  ;;  %s172_s6 = smov [#allocation2]   ;;  %s124_s10 = scalar_lea.hbm %s218_s0, 256 }
   0x2   :  { %s14_s7 = sshll.u32 %s172_s6, 4  ;;  %p125_p0 = scmp.ne.s32.totalorder %s218_s0, %s124_s10  ;;  %s15_s7 = int_to_ptr.vmem [resolvable:$true] %s14_s7 }
   0x3   :  { %p128_p1 = scmp.lt.u32.totalorder %s124_s10, %s218_s0 }
   0x5   :  { %p130_p2 = pnand %p128_p1, %p125_p0 }
   0x7   :  { %133 = shalt.err (!%p130_p2)
}
   0x8   :  { %s134_s15 = scalar_lea.vmem %s15_s7, 256  ;;  %p139_p4 = scmp.lt.s32.totalorder %s15_s7, %s15_s7 }
   0x9   :  { %p135_p3 = scmp.ne.s32.totalorder %s15_s7, %s134_s15  ;;  %p140_p5 = scmp.lt.s32.totalorder %s134_s15, %s134_s15 }
   0xb   :  { %p141_p6 = por %p140_p5, %p139_p4 }
   0xd   :  { %p142_p7 = pnand %p141_p6, %p135_p3 }
   0xf   :  { %145 = shalt.err (!%p142_p7)
}
  0x10   :  { %17 = dma.hbm_to_vmem [thread:$0]  %s218_s0, 256, %s15_s7, [#allocation3]  }
  0x11   :  { %168 = dma.done.wait [#allocation3], 256  }
  0x12   :  { %169 = vsyncadd [#allocation3], 4294967040  ;;  %v31_v0 = vlaneseq  ;;  %v173_v1 = vmov 1983009808   ;;  %v21_v6 = vld [vmem:[#allocation2] sm:$0xff]  ;;  %v22_v7 = vld [vmem:[#allocation2 + $0x8] sm:$0xff] }
  0x13   :  { %v29_v2 = vunpack.c.l.s4 %v173_v1  ;;  %v23_v8 = vmul.f32 %v21_v6, %v21_v6  ;;  %v24_v9 = vmul.f32 %v22_v7, %v22_v7  ;;  %vm69_vm0 = vcmask 1041408   ;;  %s175_s0 = smov [#allocation5]  }
  0x14   :  { %v32_v3 = vshrl.u32 %v31_v0, 7  ;;  %v174_v38 = vmov 269488144   ;;  %s109_s18 = sshll.u32 %s175_s0, 4  ;;  %s110_s18 = int_to_ptr.vmem [resolvable:$true] %s109_s18 }
  0x15   :  { %v30_v4 = vunpack.c.0.s8 %v29_v2  ;;  %v27_v10 = vcombine.high %v23_v8, %v23_v8  ;;  %v44_v14 = vcombine.high %v24_v9, %v24_v9  ;;  %v92_v39 = vunpack.c.l.s4 %v174_v38  ;;  %s146_s19 = scalar_lea.vmem %s110_s18, 256  ;;  %p151_p9 = scmp.lt.s32.totalorder %s110_s18, %s110_s18 }
  0x16   :  { %p147_p8 = scmp.ne.s32.totalorder %s110_s18, %s146_s19  ;;  %p152_p10 = scmp.lt.s32.totalorder %s146_s19, %s146_s19 }
  0x17   :  { %v33_v5 = vsub.s32 %v30_v4, %v32_v3  ;;  %v93_v40 = vunpack.c.0.s8 %v92_v39 }
  0x18   :  { %p153_p11 = por %p152_p10, %p151_p9 }
  0x19   :  { %v34_v11 = vrot.slane %v23_v8, %v33_v5  ;;  %v41_v12 = vrot.slane %v27_v10, %v33_v5  ;;  %v51_v15 = vrot.slane %v24_v9, %v33_v5  ;;  %v58_v21 = vrot.slane %v44_v14, %v33_v5 }
  0x1a   :  { %v96_v41 = vsub.s32 %v93_v40, %v32_v3  ;;  %p154_p12 = pnand %p153_p11, %p147_p8 }
  0x1b   :  { %v42_v13 = vcombine.high %v34_v11, %v34_v11  ;;  %v70_v16 = vsel %vm69_vm0, %v34_v11, 0.0  ;;  %v43_v17 = vcombine.high %v41_v12, %v41_v12  ;;  %v73_v19 = vsel %vm69_vm0, %v41_v12, 0.0 }
  0x1c   :  { %v59_v22 = vcombine.high %v51_v15, %v51_v15  ;;  %v77_v25 = vsel %vm69_vm0, %v51_v15, 0.0  ;;  %v60_v27 = vcombine.high %v58_v21, %v58_v21  ;;  %v81_v30 = vsel %vm69_vm0, %v58_v21, 0.0 }
  0x1d   :  { %v71_v18 = vsel %vm69_vm0, %v42_v13, 0.0  ;;  %v75_v23 = vsel %vm69_vm0, %v43_v17, 0.0 }
  0x1e   :  { %v72_v20 = vadd.f32 %v71_v18, %v70_v16  ;;  %v79_v28 = vsel %vm69_vm0, %v59_v22, 0.0  ;;  %v83_v32 = vsel %vm69_vm0, %v60_v27, 0.0 }
  0x20   :  { %v74_v24 = vadd.f32 %v73_v19, %v72_v20 }
  0x22   :  { %v76_v26 = vadd.f32 %v75_v23, %v74_v24 }
  0x24   :  { %v78_v29 = vadd.f32 %v77_v25, %v76_v26 }
  0x26   :  { %v80_v31 = vadd.f32 %v79_v28, %v78_v29 }
  0x28   :  { %v82_v33 = vadd.f32 %v81_v30, %v80_v31 }
  0x2a   :  { %v84_v34 = vadd.f32 %v83_v32, %v82_v33 }
  0x2c   :  { %85 = vadd.xlane.f32.xlu0 %v84_v34 }
  0xb9   :  { %v86_v35 = vpop.xlane.xlu0 %85 }
  0xba   :  { %v87_v36 = vmul.f32 0.0009765625, %v86_v35 }
  0xbc   :  { %v88_v37 = vadd.f32 1e-05, %v87_v36 }
  0xbe   :  { %122 = vrsqrt.f32 %v88_v37 }
  0xc8   :  { %v123_v42 = vpop.eup %122 }
  0xc9   :  { %v97_v43 = vrot.slane %v123_v42, %v96_v41 }
  0xcb   :  { %v99_v44 = vmul.f32 %v97_v43, %v21_v6  ;;  %v100_v45 = vmul.f32 %v97_v43, %v22_v7 }
  0xcd   :  { %101 = vst [vmem:[#allocation5] sm:$0xff] %v99_v44  ;;  %102 = vst [vmem:[#allocation5 + $0x8] sm:$0xff] %v100_v45 }
  0xce   :  { %157 = shalt.err (!%p154_p12)
}
  0xcf   :  { %s158_s22 = scalar_lea.hbm %s219_s1, 256 }
  0xd0   :  { %p159_p13 = scmp.ne.s32.totalorder %s219_s1, %s158_s22  ;;  %p162_p0 = scmp.lt.u32.totalorder %s158_s22, %s219_s1 }
  0xd2   :  { %p164_p1 = pnand %p162_p0, %p159_p13 }
  0xd4   :  { %167 = shalt.err (!%p164_p1)
}
  0xd5   :  { %112 = dma.vmem_to_hbm [thread:$0]  %s110_s18, 256, %s219_s1, [#allocation4]  }
  0xd6   :  { %170 = dma.done.wait [#allocation4], 256  }
  0xd7   :  { %171 = vsyncadd [#allocation4], 4294967040 }
  0xd8   :  { %116 = vsyncpa [#allocation3], 1 }
  0xd9   :  { %117 = vsyncpa [#allocation4], 1 }

</bundles_post_ra>
